<compile_context>
chip_gen: v5e
topology: v5e:2x2
jax: 0.10.0
libtpu: 0.0.40
codegen_flags: <defaults>
</compile_context>

<pallas_src>
import functools

import jax
import jax.numpy as jnp
from jax import lax
from jax.experimental import pallas as pl
from jax.experimental.pallas import tpu as pltpu

LANES = 128        # lane width (vreg fast axis)
SUBLANES = 8       # sublane granularity
GROUP_R = 64       # rows folded per fori_loop iteration (8 vregs per f32 input)
MAX_TILE_R = 8192  # rows per grid step: 8192*128*4B = 4 MiB per f32 input tile


def _round_up(a, b):
    return -(-a // b) * b


@functools.lru_cache(maxsize=1)
def _tensorcore_count():
    """TensorCores addressed by one pallas_call (1 on v5e/v6e, 2 on v7x)."""
    try:
        info = pltpu.get_tpu_info()
        for attr in ("num_cores", "core_count", "num_tensorcores"):
            n = getattr(info, attr, None)
            if isinstance(n, int) and n > 0:
                return n
    except Exception:
        pass
    try:
        dev = jax.devices()[0]
    except Exception:
        return 1
    for attr in ("num_cores", "core_count"):
        n = getattr(dev, attr, None)
        if isinstance(n, int) and n > 0:
            return n
    kind = str(getattr(dev, "device_kind", "")).lower()
    if any(tag in kind for tag in ("v7", "v4", "v5p")):
        return 2
    return 1


def _dice_bce_partial_kernel(x_ref, t_ref, out_ref, *, tile_r, group_r, steps,
                             rows, last_full_tile, need_mask, binary_targets):
    """One (chunk, step) grid point: accumulate per-lane partial sums.

    out_ref: (1, 3, 8, 128) f32, VMEM-resident across the inner ("arbitrary")
    grid axis.  Slot 0: sum(x*t), 1: sum(x + t), 2: sum(elementwise BCE).
    """
    s = pl.program_id(1)

    @pl.when(s == 0)
    def _():
        out_ref[...] = jnp.zeros_like(out_ref)

    # Global (unclamped) tile index.  Only the ragged boundary tile and
    # phantom tiles pay the masking cost (gated by pl.when below).
    ti = pl.program_id(0) * steps + s
    n_groups = tile_r // group_r

    def accumulate(masked):
        def body(g, carry):
            a_xt, a_xpt, a_bce = carry
            r0 = pl.multiple_of(g * group_r, group_r)
            x = x_ref[pl.ds(r0, group_r), :].astype(jnp.float32)
            t = t_ref[pl.ds(r0, group_r), :].astype(jnp.float32)
            if masked:
                row0 = ti * tile_r + r0
                rid = row0 + lax.broadcasted_iota(jnp.int32, (group_r, LANES), 0)
                valid = rid < rows
                x = jnp.where(valid, x, 0.0)
                t = jnp.where(valid, t, 0.0)
            if binary_targets:
                # Hard {0,1} labels: one log per element (EUP work halved).
                sel = jnp.where(t > 0.5, x, 1.0 - x)
                bce = -jnp.maximum(jnp.log(sel), jnp.float32(-100.0))
            else:
                # torch F.binary_cross_entropy clamps the log terms at -100.
                log_x = jnp.maximum(jnp.log(x), jnp.float32(-100.0))
                log_1mx = jnp.maximum(jnp.log1p(-x), jnp.float32(-100.0))
                bce = -(t * log_x + (1.0 - t) * log_1mx)

            def fold(v):  # (group_r, 128) -> (8, 128): pure vreg adds, no XLU
                return jnp.sum(
                    v.reshape(group_r // SUBLANES, SUBLANES, LANES), axis=0)

            return (a_xt + fold(x * t), a_xpt + fold(x + t), a_bce + fold(bce))

        zero = jnp.zeros((SUBLANES, LANES), jnp.float32)
        a_xt, a_xpt, a_bce = lax.fori_loop(0, n_groups, body, (zero, zero, zero))
        out_ref[0, 0] += a_xt
        out_ref[0, 1] += a_xpt
        out_ref[0, 2] += a_bce

    if need_mask:
        @pl.when(ti < last_full_tile)
        def _():
            accumulate(masked=False)

        @pl.when(ti >= last_full_tile)
        def _():
            accumulate(masked=True)
    else:
        accumulate(masked=False)


def dice_bce_loss(inputs, targets, smooth=1.0, weight=1.0, binary_targets=None):
    """JAX/Pallas equivalent of DiceBCELoss.forward. Returns a scalar."""
    assert inputs.shape == targets.shape
    n_elems = int(inputs.size)
    assert n_elems > 0

    if binary_targets is None:
        binary_targets = bool(jnp.issubdtype(targets.dtype, jnp.bool_) or
                              jnp.issubdtype(targets.dtype, jnp.integer))

    # Keep original dtypes (HBM traffic stays at input width); the kernel casts
    # to f32 per row-group.  reshape of a contiguous row-major array is a free
    # bitcast; the only potential copy is the pad below.
    x = inputs.reshape(-1)
    t = targets.reshape(-1)
    if t.dtype == jnp.bool_:
        t = t.astype(jnp.float32)   # avoid 1-bit refs inside the kernel

    chunk = SUBLANES * LANES
    padded = _round_up(n_elems, chunk)
    if padded != n_elems:
        # TODO(synk): for ragged totals this pad is one extra HBM copy of both
        # inputs; a fully copy-free path would run over the collapsed 2-D shape
        # with in-kernel lane masking (lane-sparse when the last dim is small).
        pad = padded - n_elems
        x = jnp.pad(x, (0, pad))
        t = jnp.pad(t, (0, pad))
    rows = padded // LANES
    x2 = x.reshape(rows, LANES)
    t2 = t.reshape(rows, LANES)

    # Row tile: as large as possible (amortizes ~0.35us/step pipeline cost),
    # a multiple of the in-kernel fold group, and never larger than the array.
    group_r = min(GROUP_R, rows)                   # multiple of 8
    tile_r = min(MAX_TILE_R, rows)
    tile_r = (tile_r // group_r) * group_r         # multiple of group_r, <= rows

    total_tiles = pl.cdiv(rows, tile_r)
    n_chunks = max(1, min(_tensorcore_count(), total_tiles))
    steps = pl.cdiv(total_tiles, n_chunks)
    ragged = total_tiles * tile_r != rows
    phantom = n_chunks * steps != total_tiles
    need_mask = ragged or phantom
    last_full_tile = rows // tile_r

    if phantom:
        def in_map(c, s):
            # Clamp phantom tiles to a valid tile; their contribution is
            # masked to zero in-kernel, so the redundant DMA is harmless.
            return (jnp.minimum(c * steps + s, total_tiles - 1), 0)
    else:
        def in_map(c, s):
            return (c * steps + s, 0)

    kernel = functools.partial(
        _dice_bce_partial_kernel, tile_r=tile_r, group_r=group_r, steps=steps,
        rows=rows, last_full_tile=last_full_tile, need_mask=need_mask,
        binary_targets=binary_targets)

    # Double-buffered input working set + headroom (cap below physical VMEM).
    in_bytes_per_step = tile_r * LANES * (x2.dtype.itemsize + t2.dtype.itemsize)
    vmem_limit = int(min(64 * 2**20,
                         max(32 * 2**20, 2 * in_bytes_per_step + (4 << 20))))

    cost = pl.CostEstimate(
        flops=int(12 * n_elems),
        transcendentals=int((1 if binary_targets else 2) * n_elems),
        bytes_accessed=int(x2.size * x2.dtype.itemsize +
                           t2.size * t2.dtype.itemsize +
                           n_chunks * 3 * SUBLANES * LANES * 4))

    partials = pl.pallas_call(
        kernel,
        out_shape=jax.ShapeDtypeStruct((n_chunks, 3, SUBLANES, LANES),
                                       jnp.float32),
        grid_spec=pltpu.PrefetchScalarGridSpec(
            num_scalar_prefetch=0,
            grid=(n_chunks, steps),
            in_specs=[
                pl.BlockSpec((tile_r, LANES), in_map),
                pl.BlockSpec((tile_r, LANES), in_map),
            ],
            out_specs=pl.BlockSpec((1, 3, SUBLANES, LANES),
                                   lambda c, s: (c, 0, 0, 0)),
        ),
        compiler_params=pltpu.CompilerParams(
            dimension_semantics=("parallel", "arbitrary"),
            vmem_limit_bytes=vmem_limit),
        cost_estimate=cost,
    )(x2, t2)

    # Final tiny reduction + loss formula on 3 * n_chunks (8,128) slabs.
    sums = jnp.sum(partials, axis=(0, 2, 3))  # (3,)
    intersection, sum_x_plus_t, sum_bce = sums[0], sums[1], sums[2]
    smooth = jnp.float32(smooth)
    dice_loss = 1.0 - (2.0 * intersection + smooth) / (sum_x_plus_t + smooth)
    bce_mean = sum_bce / jnp.float32(n_elems)
    return (bce_mean + dice_loss) * jnp.float32(weight)


def _reference_dice_bce(inputs, targets, smooth=1.0, weight=1.0):
    x = inputs.reshape(-1).astype(jnp.float32)
    t = targets.reshape(-1).astype(jnp.float32)
    intersection = jnp.sum(x * t)
    dice = 1.0 - (2.0 * intersection + smooth) / (jnp.sum(x) + jnp.sum(t) + smooth)
    log_x = jnp.maximum(jnp.log(x), -100.0)
    log_1mx = jnp.maximum(jnp.log1p(-x), -100.0)
    bce = jnp.mean(-(t * log_x + (1.0 - t) * log_1mx))
    return (bce + dice) * weight


if __name__ == "__main__":
    key = jax.random.PRNGKey(0)

    def make_case(shape, k):
        k1, k2 = jax.random.split(k)
        # Probability-valued inputs (mask logits after sigmoid), binary targets.
        inputs = jax.nn.sigmoid(jax.random.normal(k1, shape, dtype=jnp.float32))
        targets = (jax.random.uniform(k2, shape, dtype=jnp.float32) > 0.5).astype(
            jnp.float32)
        return inputs, targets

    cases = [
        ((2, 4, 16, 16), False),    # small, exactly divisible: single tile
        ((2, 3, 17, 19), False),    # ragged element count: minimal-padding path
        ((2, 4, 400, 200), False),  # multi-tile with masked ragged boundary tile
        ((2, 4, 16, 16), True),     # hard {0,1} labels: single-log BCE path
    ]
    k = key
    for shape, binary in cases:
        k, sub = jax.random.split(k)
        inputs, targets = make_case(shape, sub)
        loss = jax.block_until_ready(
            dice_bce_loss(inputs, targets, smooth=1.0, weight=1.0,
                          binary_targets=binary))
        ref = _reference_dice_bce(inputs, targets, smooth=1.0, weight=1.0)
        assert jnp.allclose(loss, ref, rtol=5e-5, atol=5e-5), (
            shape, binary, loss, ref)

    print("KERNEL_OK")
</pallas_src>

<mosaic_0001>
module attributes {stable_mosaic.version = 11 : i64} {
  func.func @_dice_bce_partial_kernel(%arg0: i32, %arg1: i32, %arg2: memref<16x128xf32, #tpu.memory_space<vmem>>, %arg3: memref<16x128xf32, #tpu.memory_space<vmem>>, %arg4: memref<1x3x8x128xf32, #tpu.memory_space<vmem>>) attributes {dimension_semantics = [#tpu.dimension_semantics<parallel>, #tpu.dimension_semantics<arbitrary>], iteration_bounds = array<i64: 1, 1>, scalar_prefetch = 0 : i64, scratch_operands = 0 : i64, tpu.core_type = #tpu.core_type<tc>, window_params = [{transform_indices = @transform_0, window_bounds = array<i64: 16, 128>}, {transform_indices = @transform_1, window_bounds = array<i64: 16, 128>}, {transform_indices = @transform_2, window_bounds = array<i64: 1, 3, 8, 128>}]} {
    %c0_i32 = arith.constant 0 : i32
    %0 = arith.cmpi eq, %arg1, %c0_i32 : i32
    %1 = arith.extui %0 : i1 to i32
    %c0_i32_0 = arith.constant 0 : i32
    %2 = arith.cmpi ne, %1, %c0_i32_0 : i32
    scf.if %2 {
      %cst_33 = arith.constant 0.000000e+00 : f32
      %54 = vector.broadcast %cst_33 : f32 to vector<1x3x8x128xf32>
      %c0_34 = arith.constant 0 : index
      %c0_35 = arith.constant 0 : index
      %c0_36 = arith.constant 0 : index
      %c0_37 = arith.constant 0 : index
      %55 = vector.load %arg4[%c0_34, %c0_35, %c0_36, %c0_37] : memref<1x3x8x128xf32, #tpu.memory_space<vmem>>, vector<1x3x8x128xf32>
      tpu.vector_store %arg4[%c0_34, %c0_35, %c0_36, %c0_37], %54 {strides = array<i32>} : memref<1x3x8x128xf32, #tpu.memory_space<vmem>>, vector<1x3x8x128xf32>,
    } else {
    }
    %cst = arith.constant 0.000000e+00 : f32
    %3 = vector.broadcast %cst : f32 to vector<8x128xf32>
    %c0_i32_1 = arith.constant 0 : i32
    %c16_i32 = arith.constant 16 : i32
    %4 = arith.muli %c0_i32_1, %c16_i32 : i32
    %5 = tpu.assume_multiple %4, 16 : i32
    %6 = arith.index_cast %5 : i32 to index
    %c0 = arith.constant 0 : index
    %7 = vector.load %arg2[%6, %c0] : memref<16x128xf32, #tpu.memory_space<vmem>>, vector<16x128xf32>
    %8 = arith.index_cast %5 : i32 to index
    %c0_2 = arith.constant 0 : index
    %9 = vector.load %arg3[%8, %c0_2] : memref<16x128xf32, #tpu.memory_space<vmem>>, vector<16x128xf32>
    %10 = math.log %7 : vector<16x128xf32>
    %cst_3 = arith.constant -1.000000e+02 : f32
    %11 = vector.broadcast %cst_3 : f32 to vector<16x128xf32>
    %12 = arith.maximumf %10, %11 : vector<16x128xf32>
    %cst_4 = arith.constant 0.000000e+00 : f32
    %13 = vector.broadcast %cst_4 : f32 to vector<16x128xf32>
    %14 = arith.subf %13, %7 : vector<16x128xf32>
    %15 = math.log1p %14 : vector<16x128xf32>
    %cst_5 = arith.constant -1.000000e+02 : f32
    %16 = vector.broadcast %cst_5 : f32 to vector<16x128xf32>
    %17 = arith.maximumf %15, %16 : vector<16x128xf32>
    %18 = arith.mulf %9, %12 : vector<16x128xf32>
    %cst_6 = arith.constant 1.000000e+00 : f32
    %19 = vector.broadcast %cst_6 : f32 to vector<16x128xf32>
    %20 = arith.subf %19, %9 : vector<16x128xf32>
    %21 = arith.mulf %20, %17 : vector<16x128xf32>
    %22 = arith.addf %18, %21 : vector<16x128xf32>
    %cst_7 = arith.constant 0.000000e+00 : f32
    %23 = vector.broadcast %cst_7 : f32 to vector<16x128xf32>
    %24 = arith.subf %23, %22 : vector<16x128xf32>
    %25 = arith.mulf %7, %9 : vector<16x128xf32>
    %26 = vector.shape_cast %25 : vector<16x128xf32> to vector<2x8x128xf32>
    %cst_8 = arith.constant dense<0.000000e+00> : vector<8x128xf32>
    %27 = vector.multi_reduction <add>, %26, %cst_8 [0] : vector<2x8x128xf32> to vector<8x128xf32>
    %28 = arith.addf %3, %27 : vector<8x128xf32>
    %29 = arith.addf %7, %9 : vector<16x128xf32>
    %30 = vector.shape_cast %29 : vector<16x128xf32> to vector<2x8x128xf32>
    %cst_9 = arith.constant dense<0.000000e+00> : vector<8x128xf32>
    %31 = vector.multi_reduction <add>, %30, %cst_9 [0] : vector<2x8x128xf32> to vector<8x128xf32>
    %32 = arith.addf %3, %31 : vector<8x128xf32>
    %33 = vector.shape_cast %24 : vector<16x128xf32> to vector<2x8x128xf32>
    %cst_10 = arith.constant dense<0.000000e+00> : vector<8x128xf32>
    %34 = vector.multi_reduction <add>, %33, %cst_10 [0] : vector<2x8x128xf32> to vector<8x128xf32>
    %35 = arith.addf %3, %34 : vector<8x128xf32>
    %c1_i32 = arith.constant 1 : i32
    %c0_11 = arith.constant 0 : index
    %c0_12 = arith.constant 0 : index
    %c0_13 = arith.constant 0 : index
    %c0_14 = arith.constant 0 : index
    %36 = vector.load %arg4[%c0_11, %c0_12, %c0_13, %c0_14] : memref<1x3x8x128xf32, #tpu.memory_space<vmem>>, vector<1x1x8x128xf32>
    %37 = vector.shape_cast %36 : vector<1x1x8x128xf32> to vector<8x128xf32>
    %38 = arith.addf %37, %28 : vector<8x128xf32>
    %c0_15 = arith.constant 0 : index
    %c0_16 = arith.constant 0 : index
    %c0_17 = arith.constant 0 : index
    %c0_18 = arith.constant 0 : index
    %39 = vector.load %arg4[%c0_15, %c0_16, %c0_17, %c0_18] : memref<1x3x8x128xf32, #tpu.memory_space<vmem>>, vector<1x1x8x128xf32>
    %40 = vector.shape_cast %39 : vector<1x1x8x128xf32> to vector<8x128xf32>
    %41 = vector.shape_cast %38 : vector<8x128xf32> to vector<1x1x8x128xf32>
    tpu.vector_store %arg4[%c0_15, %c0_16, %c0_17, %c0_18], %41 {strides = array<i32>} : memref<1x3x8x128xf32, #tpu.memory_space<vmem>>, vector<1x1x8x128xf32>,
    %c0_19 = arith.constant 0 : index
    %c1 = arith.constant 1 : index
    %c0_20 = arith.constant 0 : index
    %c0_21 = arith.constant 0 : index
    %42 = vector.load %arg4[%c0_19, %c1, %c0_20, %c0_21] : memref<1x3x8x128xf32, #tpu.memory_space<vmem>>, vector<1x1x8x128xf32>
    %43 = vector.shape_cast %42 : vector<1x1x8x128xf32> to vector<8x128xf32>
    %44 = arith.addf %43, %32 : vector<8x128xf32>
    %c0_22 = arith.constant 0 : index
    %c1_23 = arith.constant 1 : index
    %c0_24 = arith.constant 0 : index
    %c0_25 = arith.constant 0 : index
    %45 = vector.load %arg4[%c0_22, %c1_23, %c0_24, %c0_25] : memref<1x3x8x128xf32, #tpu.memory_space<vmem>>, vector<1x1x8x128xf32>
    %46 = vector.shape_cast %45 : vector<1x1x8x128xf32> to vector<8x128xf32>
    %47 = vector.shape_cast %44 : vector<8x128xf32> to vector<1x1x8x128xf32>
    tpu.vector_store %arg4[%c0_22, %c1_23, %c0_24, %c0_25], %47 {strides = array<i32>} : memref<1x3x8x128xf32, #tpu.memory_space<vmem>>, vector<1x1x8x128xf32>,
    %c0_26 = arith.constant 0 : index
    %c2 = arith.constant 2 : index
    %c0_27 = arith.constant 0 : index
    %c0_28 = arith.constant 0 : index
    %48 = vector.load %arg4[%c0_26, %c2, %c0_27, %c0_28] : memref<1x3x8x128xf32, #tpu.memory_space<vmem>>, vector<1x1x8x128xf32>
    %49 = vector.shape_cast %48 : vector<1x1x8x128xf32> to vector<8x128xf32>
    %50 = arith.addf %49, %35 : vector<8x128xf32>
    %c0_29 = arith.constant 0 : index
    %c2_30 = arith.constant 2 : index
    %c0_31 = arith.constant 0 : index
    %c0_32 = arith.constant 0 : index
    %51 = vector.load %arg4[%c0_29, %c2_30, %c0_31, %c0_32] : memref<1x3x8x128xf32, #tpu.memory_space<vmem>>, vector<1x1x8x128xf32>
    %52 = vector.shape_cast %51 : vector<1x1x8x128xf32> to vector<8x128xf32>
    %53 = vector.shape_cast %50 : vector<8x128xf32> to vector<1x1x8x128xf32>
    tpu.vector_store %arg4[%c0_29, %c2_30, %c0_31, %c0_32], %53 {strides = array<i32>} : memref<1x3x8x128xf32, #tpu.memory_space<vmem>>, vector<1x1x8x128xf32>,
    return
  }
  func.func @transform_0(%arg0: i32, %arg1: i32) -> (i32, i32) {
    %c1_i32 = arith.constant 1 : i32
    %0 = arith.muli %arg0, %c1_i32 : i32
    %1 = arith.addi %0, %arg1 : i32
    %c0_i32 = arith.constant 0 : i32
    %c0_i32_0 = arith.constant 0 : i32
    return %1, %c0_i32 : i32, i32
  }
  func.func @transform_1(%arg0: i32, %arg1: i32) -> (i32, i32) {
    %c1_i32 = arith.constant 1 : i32
    %0 = arith.muli %arg0, %c1_i32 : i32
    %1 = arith.addi %0, %arg1 : i32
    %c0_i32 = arith.constant 0 : i32
    %c0_i32_0 = arith.constant 0 : i32
    return %1, %c0_i32 : i32, i32
  }
  func.func @transform_2(%arg0: i32, %arg1: i32) -> (i32, i32, i32, i32) {
    %c0_i32 = arith.constant 0 : i32
    %c0_i32_0 = arith.constant 0 : i32
    %c0_i32_1 = arith.constant 0 : i32
    %c0_i32_2 = arith.constant 0 : i32
    return %arg0, %c0_i32, %c0_i32_0, %c0_i32_1 : i32, i32, i32, i32
  }
}

</mosaic_0001>

<bundles_post_ra>
// kernel: tpu_custom_call.1
= control target key start
LH: loop header
LB: loop body
LE: loop exit
PB: predicated region body
PF: predicated region fallthrough
CT: control target
= control target key end

     0   :  { %7 = vsyncpa [#allocation3], 0  ;;  %s276_s0 = inlined_call_operand.hbm [shape: f32[16,128], index: 0, kind: input, shape index: {}]   ;;  %s277_s1 = inlined_call_operand.hbm [shape: f32[16,128], index: 1, kind: input, shape index: {}]   ;;  %s278_s2 = inlined_call_operand.hbm [shape: f32[1,3,8,128], index: 2, kind: output, shape index: {}]  }
   0x1   :  { %8 = vsyncpa [#allocation6], 0 }
   0x2   :  { %9 = vsyncpa [#allocation4], 0  ;;  %s18_s11 = sshll.u32 %s276_s0, 4  ;;  %s238_s12 = smov [#allocation2]   ;;  %s19_s11 = int_to_ptr.hbm [resolvable:$true] %s18_s11 }
   0x3   :  { %s20_s13 = sshll.u32 %s238_s12, 4  ;;  %s35_s16 = sshll.u32 %s277_s1, 4  ;;  %s21_s13 = int_to_ptr.vmem [resolvable:$true] %s20_s13  ;;  %s36_s16 = int_to_ptr.hbm [resolvable:$true] %s35_s16 }
   0x4   :  { %s239_s17 = smov 128   ;;  %s240_s18 = smov 8  }
   0x5   :  { %26 = dma.hbm_to_vmem [thread:$0]  %s19_s11, 256, %s21_s13, [#allocation3], %s239_s17, %s239_s17, %s240_s18  }
   0x6   :  { %s241_s19 = smov [#allocation5]  }
   0x7   :  { %s37_s20 = sshll.u32 %s241_s19, 4  ;;  %s38_s20 = int_to_ptr.vmem [resolvable:$true] %s37_s20 }
   0x8   :  { %43 = dma.hbm_to_vmem [thread:$0]  %s36_s16, 256, %s38_s20, [#allocation6], %s239_s17, %s239_s17, %s240_s18  }
   0x9   :  { %232 = dma.done.wait [#allocation3], 256  }
   0xa   :  { %233 = vsyncadd [#allocation3], 4294967040 }
   0xb   :  { %234 = dma.done.wait [#allocation6], 256  }
   0xc   :  { %235 = vsyncadd [#allocation6], 4294967040  ;;  %v63_v0 = vld [vmem:[#allocation2] sm:$0xff]  ;;  %v64_v1 = vld [vmem:[#allocation2 + $0x8] sm:$0xff]  ;;  %s242_s0 = smov [#allocation7]   ;;  %s132_s23 = sshll.u32 %s278_s2, 4  ;;  %s133_s23 = int_to_ptr.hbm [resolvable:$true] %s132_s23 }
   0xd   :  { %v65_v2 = vld [vmem:[#allocation5] sm:$0xff]  ;;  %v66_v3 = vld [vmem:[#allocation5 + $0x8] sm:$0xff]  ;;  %v73_v4 = vsub.f32 0.0, %v63_v0  ;;  %v74_v5 = vsub.f32 0.0, %v64_v1  ;;  %152 = vlog2.f32 %v63_v0  ;;  %s130_s1 = sshll.u32 %s242_s0, 4  ;;  %s131_s1 = int_to_ptr.vmem [resolvable:$true] %s130_s1 }
   0xe   :  { %v105_v6 = vmul.f32 %v65_v2, %v63_v0  ;;  %v109_v7 = vadd.f32 %v65_v2, %v63_v0  ;;  %v106_v8 = vmul.f32 %v66_v3, %v64_v1  ;;  %v110_v9 = vadd.f32 %v66_v3, %v64_v1 }
   0xf   :  { %154 = vlog2.f32 %v64_v1  ;;  %v75_v10 = vadd.f32 1.0, %v73_v4  ;;  %v78_v11 = vmul.f32 -0.5, %v73_v4  ;;  %v84_v14 = vadd.f32 1.0, %v74_v5 }
  0x10   :  { %v107_v12 = vadd.f32 %v106_v8, %v105_v6  ;;  %v111_v13 = vadd.f32 %v110_v9, %v109_v7  ;;  %v87_v15 = vmul.f32 -0.5, %v74_v5  ;;  %v81_v17 = vand.u32 2147483647, %v73_v4 }
  0x11   :  { %156 = vlog2.f32 %v75_v10  ;;  %v79_v16 = vadd.f32 1.0, %v78_v11  ;;  %v90_v20 = vand.u32 2147483647, %v74_v5  ;;  %v97_v32 = vsub.f32 1.0, %v65_v2 }
  0x12   :  { %158 = vlog2.f32 %v84_v14  ;;  %v88_v18 = vadd.f32 1.0, %v87_v15  ;;  %117 = vst [vmem:[#allocation7] sm:$0xff] %v107_v12  ;;  %vm82_vm0 = vcmp.lt.f32.partialorder %v81_v17, 0.0004427343  ;;  %v98_v34 = vsub.f32 1.0, %v66_v3 }
  0x13   :  { %v153_v19 = vpop.eup %152  ;;  %121 = vst [vmem:[#allocation7 + $0x8] sm:$0xff] %v111_v13  ;;  %v80_v24 = vmul.f32 %v79_v16, %v73_v4  ;;  %vm91_vm1 = vcmp.lt.f32.partialorder %v90_v20, 0.0004427343 }
  0x14   :  { %v68_v22 = vmul.f32 0.6931472, %v153_v19  ;;  %v89_v27 = vmul.f32 %v88_v18, %v74_v5 }
  0x15   :  { %v155_v21 = vpop.eup %154 }
  0x16   :  { %v70_v23 = vmul.f32 0.6931472, %v155_v21  ;;  %v71_v26 = vmax.f32 %v68_v22, -100.0 }
  0x17   :  { %v157_v25 = vpop.eup %156 }
  0x18   :  { %v159_v28 = vpop.eup %158  ;;  %v72_v29 = vmax.f32 %v70_v23, -100.0  ;;  %v77_v30 = vmul.f32 0.6931472, %v157_v25  ;;  %v95_v37 = vmul.f32 %v71_v26, %v65_v2 }
  0x19   :  { %v86_v31 = vmul.f32 0.6931472, %v159_v28 }
  0x1a   :  { %v83_v33 = vsel %vm82_vm0, %v80_v24, %v77_v30  ;;  %v96_v39 = vmul.f32 %v72_v29, %v66_v3 }
  0x1b   :  { %v92_v35 = vsel %vm91_vm1, %v89_v27, %v86_v31  ;;  %v93_v36 = vmax.f32 %v83_v33, -100.0 }
  0x1c   :  { %v94_v38 = vmax.f32 %v92_v35, -100.0 }
  0x1d   :  { %v99_v40 = vmul.f32 %v97_v32, %v93_v36 }
  0x1e   :  { %v100_v41 = vmul.f32 %v98_v34, %v94_v38 }
  0x1f   :  { %v101_v42 = vadd.f32 %v99_v40, %v95_v37 }
  0x20   :  { %v102_v43 = vadd.f32 %v100_v41, %v96_v39 }
  0x21   :  { %v103_v44 = vsub.f32 0.0, %v101_v42 }
  0x22   :  { %v104_v45 = vsub.f32 0.0, %v102_v43 }
  0x24   :  { %v113_v46 = vadd.f32 %v104_v45, %v103_v44 }
  0x26   :  { %125 = vst [vmem:[#allocation7 + $0x10] sm:$0xff] %v113_v46 }
  0x27   :  { %138 = dma.vmem_to_hbm [thread:$0]  %s131_s1, 384, %s133_s23, [#allocation4], %s239_s17, %s239_s17, %s240_s18  }
  0x28   :  { %236 = dma.done.wait [#allocation4], 384  }
  0x29   :  { %237 = vsyncadd [#allocation4], 4294966912 }
  0x2a   :  { %143 = vsyncpa [#allocation3], 1 }
  0x2b   :  { %144 = vsyncpa [#allocation6], 1 }
  0x2c   :  { %145 = vsyncpa [#allocation4], 1 }

</bundles_post_ra>
